<compile_context>
chip_gen: v7x
topology: tpu7x:2x2x1
jax: 0.10.0
libtpu: 0.0.40
codegen_flags: <defaults>
</compile_context>

<pallas_src>
import functools

import jax
import jax.numpy as jnp
from jax import lax
from jax.experimental import pallas as pl
from jax.experimental.pallas import tpu as pltpu

K_PAD = 896        # 784 padded to 7*128
H1 = 256
H2 = 256
H3_PAD = 128       # 64 padded to 128
OUT_PAD = 128      # 10 padded to 128 (lane-dense output)
NUM_CLASSES = 10
NEG_FILL = -1e30   # bias fill for padded logit lanes -> exp() == 0


def _round_up(x, m):
    return (x + m - 1) // m * m


def _mlp_kernel(x_ref, w1_ref, b1_ref, w2_ref, b2_ref, w3_ref, b3_ref,
                w4_ref, b4_ref, o_ref, *, sb):
    """One batch tile: run SB-row sub-blocks through the full 4-layer chain."""
    n_sub = x_ref.shape[0] // sb

    def body(r, carry):
        rs = pl.multiple_of(r * sb, sb)
        xb = x_ref[pl.ds(rs, sb), :]                       # [sb, K_PAD] bf16
        # fc1 + relu (bf16 MXU, f32 accumulate, f32 elementwise)
        h = jnp.dot(xb, w1_ref[...], preferred_element_type=jnp.float32)
        h = jnp.maximum(h + b1_ref[...], 0.0)
        # fc2 + relu
        h = jnp.dot(h.astype(jnp.bfloat16), w2_ref[...],
                    preferred_element_type=jnp.float32)
        h = jnp.maximum(h + b2_ref[...], 0.0)
        # fc3 + relu (padded to 128 lanes; padded cols are exactly 0)
        h = jnp.dot(h.astype(jnp.bfloat16), w3_ref[...],
                    preferred_element_type=jnp.float32)
        h = jnp.maximum(h + b3_ref[...], 0.0)
        # fc4 logits (padded to 128 lanes; padded lanes biased to -1e30)
        logits = jnp.dot(h.astype(jnp.bfloat16), w4_ref[...],
                         preferred_element_type=jnp.float32)
        logits = logits + b4_ref[...]
        # log_softmax over the last axis (padded lanes contribute exp() == 0)
        m = jnp.max(logits, axis=-1, keepdims=True)
        shifted = logits - m
        lse = jnp.log(jnp.sum(jnp.exp(shifted), axis=-1, keepdims=True))
        o_ref[pl.ds(rs, sb), :] = shifted - lse
        return carry

    lax.fori_loop(0, n_sub, body, 0, unroll=True)


@functools.partial(jax.jit, static_argnames=("tb", "sb"))
def mlp_forward(x_nchw, params, *, tb=1024, sb=256):
    """x_nchw: [B, 1, 28, 28] float32 -> log-probs [B, 10] float32."""
    B = x_nchw.shape[0]
    x = x_nchw.reshape(B, -1).astype(jnp.float32)          # flatten(x, 1)
    w1, b1, w2, b2, w3, b3, w4, b4 = params                # [in, out] / [1, out]

    # --- lane-dense padding of the parameter/feature dims -------------------
    x_p = jnp.pad(x, ((0, 0), (0, K_PAD - x.shape[1])))
    w1_p = jnp.pad(w1, ((0, K_PAD - w1.shape[0]), (0, 0)))
    w3_p = jnp.pad(w3, ((0, 0), (0, H3_PAD - w3.shape[1])))
    b3_p = jnp.pad(b3, ((0, 0), (0, H3_PAD - b3.shape[1])))
    w4_p = jnp.pad(w4, ((0, H3_PAD - w4.shape[0]), (0, OUT_PAD - w4.shape[1])))
    b4_p = jnp.pad(b4, ((0, 0), (0, OUT_PAD - b4.shape[1])),
                   constant_values=NEG_FILL)

    # bf16 matmul operands; biases stay f32 for the elementwise chain.
    x_b = x_p.astype(jnp.bfloat16)
    w1_b = w1_p.astype(jnp.bfloat16)
    w2_b = w2.astype(jnp.bfloat16)
    w3_b = w3_p.astype(jnp.bfloat16)
    w4_b = w4_p.astype(jnp.bfloat16)

    # --- batch tiling --------------------------------------------------------
    tb = min(tb, _round_up(B, 8))
    tb = _round_up(tb, 8)
    b_pad = _round_up(B, tb)
    if b_pad != B:
        x_b = jnp.pad(x_b, ((0, b_pad - B), (0, 0)))
    sb = min(sb, tb)
    while tb % sb:          # sb must divide tb (stays a multiple of 8)
        sb -= 8

    out_pad = pl.pallas_call(
        functools.partial(_mlp_kernel, sb=sb),
        out_shape=jax.ShapeDtypeStruct((b_pad, OUT_PAD), jnp.float32),
        grid=(b_pad // tb,),
        in_specs=[
            pl.BlockSpec((tb, K_PAD), lambda i: (i, 0)),       # x: streamed
            pl.BlockSpec((K_PAD, H1), lambda i: (0, 0)),       # weights: resident
            pl.BlockSpec((1, H1), lambda i: (0, 0)),
            pl.BlockSpec((H1, H2), lambda i: (0, 0)),
            pl.BlockSpec((1, H2), lambda i: (0, 0)),
            pl.BlockSpec((H2, H3_PAD), lambda i: (0, 0)),
            pl.BlockSpec((1, H3_PAD), lambda i: (0, 0)),
            pl.BlockSpec((H3_PAD, OUT_PAD), lambda i: (0, 0)),
            pl.BlockSpec((1, OUT_PAD), lambda i: (0, 0)),
        ],
        out_specs=pl.BlockSpec((tb, OUT_PAD), lambda i: (i, 0)),
        compiler_params=pltpu.CompilerParams(
            dimension_semantics=("parallel",)),
    )(x_b, w1_b, b1, w2_b, b2, w3_b, b3_p, w4_b, b4_p)

    return out_pad[:B, :NUM_CLASSES]


def init_params(key):
    """PyTorch-Linear-style init; weights stored [in, out], biases [1, out]."""
    dims = [(784, 256), (256, 256), (256, 64), (64, 10)]
    params = []
    for fan_in, fan_out in dims:
        kw, kb, key = jax.random.split(key, 3)
        bound = 1.0 / jnp.sqrt(float(fan_in))
        w = jax.random.uniform(kw, (fan_in, fan_out), jnp.float32, -bound, bound)
        b = jax.random.uniform(kb, (1, fan_out), jnp.float32, -bound, bound)
        params.extend([w, b])
    return tuple(params)


def reference_forward(x_nchw, params):
    """Plain-JAX reference with the same bf16-operand / f32-accumulate math."""
    x = x_nchw.reshape(x_nchw.shape[0], -1).astype(jnp.float32)
    w1, b1, w2, b2, w3, b3, w4, b4 = params

    def dot(a, w):
        return jnp.dot(a.astype(jnp.bfloat16), w.astype(jnp.bfloat16),
                       preferred_element_type=jnp.float32)

    h = jnp.maximum(dot(x, w1) + b1, 0.0)
    h = jnp.maximum(dot(h, w2) + b2, 0.0)
    h = jnp.maximum(dot(h, w3) + b3, 0.0)
    logits = dot(h, w4) + b4
    return jax.nn.log_softmax(logits, axis=1)


if __name__ == "__main__":
    key = jax.random.PRNGKey(0)
    kx, kp = jax.random.split(key)
    params = init_params(kp)

    # Small batch (tile clamps to the whole batch: single grid step).
    B = 8
    x = jax.random.normal(kx, (B, 1, 28, 28), jnp.float32)   # NCHW like PyTorch
    out = jax.block_until_ready(mlp_forward(x, params))
    ref = reference_forward(x, params)
    assert out.shape == (B, NUM_CLASSES)
    assert jnp.allclose(out, ref, atol=1e-3, rtol=1e-3), "mismatch vs reference (B=8)"

    # Multi-step grid path: batch padding + streamed tiles + output slicing.
    B2 = 300
    x2 = jax.random.normal(kx, (B2, 1, 28, 28), jnp.float32)
    out2 = jax.block_until_ready(mlp_forward(x2, params, tb=128, sb=64))
    ref2 = reference_forward(x2, params)
    assert out2.shape == (B2, NUM_CLASSES)
    assert jnp.allclose(out2, ref2, atol=1e-3, rtol=1e-3), "mismatch vs reference (B=300)"

    print("KERNEL_OK")
</pallas_src>

<mosaic_0001>
module attributes {stable_mosaic.version = 11 : i64} {
  func.func @_mlp_kernel(%arg0: i32, %arg1: memref<8x896xbf16, #tpu.memory_space<vmem>>, %arg2: memref<896x256xbf16, #tpu.memory_space<vmem>>, %arg3: memref<1x256xf32, #tpu.memory_space<vmem>>, %arg4: memref<256x256xbf16, #tpu.memory_space<vmem>>, %arg5: memref<1x256xf32, #tpu.memory_space<vmem>>, %arg6: memref<256x128xbf16, #tpu.memory_space<vmem>>, %arg7: memref<1x128xf32, #tpu.memory_space<vmem>>, %arg8: memref<128x128xbf16, #tpu.memory_space<vmem>>, %arg9: memref<1x128xf32, #tpu.memory_space<vmem>>, %arg10: memref<8x128xf32, #tpu.memory_space<vmem>>) attributes {dimension_semantics = [#tpu.dimension_semantics<parallel>], iteration_bounds = array<i64: 1>, scalar_prefetch = 0 : i64, scratch_operands = 0 : i64, tpu.core_type = #tpu.core_type<tc>, window_params = [{transform_indices = @transform_0, window_bounds = array<i64: 8, 896>}, {pipeline_mode = #tpu.pipeline_mode<synchronous>, transform_indices = @transform_1, window_bounds = array<i64: 896, 256>}, {pipeline_mode = #tpu.pipeline_mode<synchronous>, transform_indices = @transform_2, window_bounds = array<i64: 1, 256>}, {pipeline_mode = #tpu.pipeline_mode<synchronous>, transform_indices = @transform_3, window_bounds = array<i64: 256, 256>}, {pipeline_mode = #tpu.pipeline_mode<synchronous>, transform_indices = @transform_4, window_bounds = array<i64: 1, 256>}, {pipeline_mode = #tpu.pipeline_mode<synchronous>, transform_indices = @transform_5, window_bounds = array<i64: 256, 128>}, {pipeline_mode = #tpu.pipeline_mode<synchronous>, transform_indices = @transform_6, window_bounds = array<i64: 1, 128>}, {pipeline_mode = #tpu.pipeline_mode<synchronous>, transform_indices = @transform_7, window_bounds = array<i64: 128, 128>}, {pipeline_mode = #tpu.pipeline_mode<synchronous>, transform_indices = @transform_8, window_bounds = array<i64: 1, 128>}, {transform_indices = @transform_9, window_bounds = array<i64: 8, 128>}]} {
    %c0_i32 = arith.constant 0 : i32
    %c8_i32 = arith.constant 8 : i32
    %0 = arith.muli %c0_i32, %c8_i32 : i32
    %1 = tpu.assume_multiple %0, 8 : i32
    %2 = arith.index_cast %1 : i32 to index
    %c0 = arith.constant 0 : index
    %3 = vector.load %arg1[%2, %c0] : memref<8x896xbf16, #tpu.memory_space<vmem>>, vector<8x896xbf16>
    %c0_0 = arith.constant 0 : index
    %c0_1 = arith.constant 0 : index
    %4 = vector.load %arg2[%c0_0, %c0_1] : memref<896x256xbf16, #tpu.memory_space<vmem>>, vector<896x256xbf16>
    %cst = arith.constant dense<0.000000e+00> : vector<8x256xf32>
    %5 = tpu.matmul %3, %4, %cst {dimension_numbers = #tpu.dot_dimension_numbers<[1], [0], [0], [1], [0, 0, 1, 1], [], []>} : vector<8x896xbf16>, vector<896x256xbf16>, vector<8x256xf32> -> vector<8x256xf32>
    %c0_2 = arith.constant 0 : index
    %c0_3 = arith.constant 0 : index
    %6 = vector.load %arg3[%c0_2, %c0_3] : memref<1x256xf32, #tpu.memory_space<vmem>>, vector<1x256xf32>
    %7 = vector.broadcast %6 : vector<1x256xf32> to vector<8x256xf32>
    %8 = arith.addf %5, %7 : vector<8x256xf32>
    %cst_4 = arith.constant 0.000000e+00 : f32
    %9 = vector.broadcast %cst_4 : f32 to vector<8x256xf32>
    %10 = arith.maximumf %8, %9 : vector<8x256xf32>
    %11 = arith.truncf %10 : vector<8x256xf32> to vector<8x256xbf16>
    %c0_5 = arith.constant 0 : index
    %c0_6 = arith.constant 0 : index
    %12 = vector.load %arg4[%c0_5, %c0_6] : memref<256x256xbf16, #tpu.memory_space<vmem>>, vector<256x256xbf16>
    %cst_7 = arith.constant dense<0.000000e+00> : vector<8x256xf32>
    %13 = tpu.matmul %11, %12, %cst_7 {dimension_numbers = #tpu.dot_dimension_numbers<[1], [0], [0], [1], [0, 0, 1, 1], [], []>} : vector<8x256xbf16>, vector<256x256xbf16>, vector<8x256xf32> -> vector<8x256xf32>
    %c0_8 = arith.constant 0 : index
    %c0_9 = arith.constant 0 : index
    %14 = vector.load %arg5[%c0_8, %c0_9] : memref<1x256xf32, #tpu.memory_space<vmem>>, vector<1x256xf32>
    %15 = vector.broadcast %14 : vector<1x256xf32> to vector<8x256xf32>
    %16 = arith.addf %13, %15 : vector<8x256xf32>
    %cst_10 = arith.constant 0.000000e+00 : f32
    %17 = vector.broadcast %cst_10 : f32 to vector<8x256xf32>
    %18 = arith.maximumf %16, %17 : vector<8x256xf32>
    %19 = arith.truncf %18 : vector<8x256xf32> to vector<8x256xbf16>
    %c0_11 = arith.constant 0 : index
    %c0_12 = arith.constant 0 : index
    %20 = vector.load %arg6[%c0_11, %c0_12] : memref<256x128xbf16, #tpu.memory_space<vmem>>, vector<256x128xbf16>
    %cst_13 = arith.constant dense<0.000000e+00> : vector<8x128xf32>
    %21 = tpu.matmul %19, %20, %cst_13 {dimension_numbers = #tpu.dot_dimension_numbers<[1], [0], [0], [1], [0, 0, 1, 1], [], []>} : vector<8x256xbf16>, vector<256x128xbf16>, vector<8x128xf32> -> vector<8x128xf32>
    %c0_14 = arith.constant 0 : index
    %c0_15 = arith.constant 0 : index
    %22 = vector.load %arg7[%c0_14, %c0_15] : memref<1x128xf32, #tpu.memory_space<vmem>>, vector<1x128xf32>
    %23 = vector.broadcast %22 : vector<1x128xf32> to vector<8x128xf32>
    %24 = arith.addf %21, %23 : vector<8x128xf32>
    %cst_16 = arith.constant 0.000000e+00 : f32
    %25 = vector.broadcast %cst_16 : f32 to vector<8x128xf32>
    %26 = arith.maximumf %24, %25 : vector<8x128xf32>
    %27 = arith.truncf %26 : vector<8x128xf32> to vector<8x128xbf16>
    %c0_17 = arith.constant 0 : index
    %c0_18 = arith.constant 0 : index
    %28 = vector.load %arg8[%c0_17, %c0_18] : memref<128x128xbf16, #tpu.memory_space<vmem>>, vector<128x128xbf16>
    %cst_19 = arith.constant dense<0.000000e+00> : vector<8x128xf32>
    %29 = tpu.matmul %27, %28, %cst_19 {dimension_numbers = #tpu.dot_dimension_numbers<[1], [0], [0], [1], [0, 0, 1, 1], [], []>} : vector<8x128xbf16>, vector<128x128xbf16>, vector<8x128xf32> -> vector<8x128xf32>
    %c0_20 = arith.constant 0 : index
    %c0_21 = arith.constant 0 : index
    %30 = vector.load %arg9[%c0_20, %c0_21] : memref<1x128xf32, #tpu.memory_space<vmem>>, vector<1x128xf32>
    %31 = vector.broadcast %30 : vector<1x128xf32> to vector<8x128xf32>
    %32 = arith.addf %29, %31 : vector<8x128xf32>
    %cst_22 = arith.constant dense<0xFF800000> : vector<8xf32>
    %33 = vector.multi_reduction <maximumf>, %32, %cst_22 [1] : vector<8x128xf32> to vector<8xf32>
    %34 = vector.shape_cast %33 : vector<8xf32> to vector<8x1xf32>
    %35 = vector.broadcast %34 : vector<8x1xf32> to vector<8x128xf32>
    %36 = arith.subf %32, %35 : vector<8x128xf32>
    %37 = math.exp %36 : vector<8x128xf32>
    %cst_23 = arith.constant dense<0.000000e+00> : vector<8xf32>
    %38 = vector.multi_reduction <add>, %37, %cst_23 [1] : vector<8x128xf32> to vector<8xf32>
    %39 = vector.shape_cast %38 : vector<8xf32> to vector<8x1xf32>
    %40 = math.log %39 : vector<8x1xf32>
    %41 = vector.broadcast %40 : vector<8x1xf32> to vector<8x128xf32>
    %42 = arith.subf %36, %41 : vector<8x128xf32>
    %43 = arith.index_cast %1 : i32 to index
    %c0_24 = arith.constant 0 : index
    %44 = vector.load %arg10[%43, %c0_24] : memref<8x128xf32, #tpu.memory_space<vmem>>, vector<8x128xf32>
    tpu.vector_store %arg10[%43, %c0_24], %42 {strides = array<i32>} : memref<8x128xf32, #tpu.memory_space<vmem>>, vector<8x128xf32>,
    %c1_i32 = arith.constant 1 : i32
    return
  }
  func.func @transform_0(%arg0: i32) -> (i32, i32) {
    %c0_i32 = arith.constant 0 : i32
    %c0_i32_0 = arith.constant 0 : i32
    return %arg0, %c0_i32 : i32, i32
  }
  func.func @transform_1(%arg0: i32) -> (i32, i32) {
    %c0_i32 = arith.constant 0 : i32
    %c0_i32_0 = arith.constant 0 : i32
    %c0_i32_1 = arith.constant 0 : i32
    return %c0_i32, %c0_i32_0 : i32, i32
  }
  func.func @transform_2(%arg0: i32) -> (i32, i32) {
    %c0_i32 = arith.constant 0 : i32
    %c0_i32_0 = arith.constant 0 : i32
    %c0_i32_1 = arith.constant 0 : i32
    return %c0_i32, %c0_i32_0 : i32, i32
  }
  func.func @transform_3(%arg0: i32) -> (i32, i32) {
    %c0_i32 = arith.constant 0 : i32
    %c0_i32_0 = arith.constant 0 : i32
    %c0_i32_1 = arith.constant 0 : i32
    return %c0_i32, %c0_i32_0 : i32, i32
  }
  func.func @transform_4(%arg0: i32) -> (i32, i32) {
    %c0_i32 = arith.constant 0 : i32
    %c0_i32_0 = arith.constant 0 : i32
    %c0_i32_1 = arith.constant 0 : i32
    return %c0_i32, %c0_i32_0 : i32, i32
  }
  func.func @transform_5(%arg0: i32) -> (i32, i32) {
    %c0_i32 = arith.constant 0 : i32
    %c0_i32_0 = arith.constant 0 : i32
    %c0_i32_1 = arith.constant 0 : i32
    return %c0_i32, %c0_i32_0 : i32, i32
  }
  func.func @transform_6(%arg0: i32) -> (i32, i32) {
    %c0_i32 = arith.constant 0 : i32
    %c0_i32_0 = arith.constant 0 : i32
    %c0_i32_1 = arith.constant 0 : i32
    return %c0_i32, %c0_i32_0 : i32, i32
  }
  func.func @transform_7(%arg0: i32) -> (i32, i32) {
    %c0_i32 = arith.constant 0 : i32
    %c0_i32_0 = arith.constant 0 : i32
    %c0_i32_1 = arith.constant 0 : i32
    return %c0_i32, %c0_i32_0 : i32, i32
  }
  func.func @transform_8(%arg0: i32) -> (i32, i32) {
    %c0_i32 = arith.constant 0 : i32
    %c0_i32_0 = arith.constant 0 : i32
    %c0_i32_1 = arith.constant 0 : i32
    return %c0_i32, %c0_i32_0 : i32, i32
  }
  func.func @transform_9(%arg0: i32) -> (i32, i32) {
    %c0_i32 = arith.constant 0 : i32
    %c0_i32_0 = arith.constant 0 : i32
    return %arg0, %c0_i32 : i32, i32
  }
}

</mosaic_0001>

<bundles_post_ra>
// kernel: mlp_forward.1
= control target key start
LH: loop header
LB: loop body
LE: loop exit
PB: predicated region body
PF: predicated region fallthrough
CT: control target
= control target key end

     0   :  { %s2605_s0 = inlined_call_operand.vmem [shape: bf16[8,896], index: 0, kind: input, shape index: {}]   ;;  %s2606_s1 = inlined_call_operand.vmem [shape: bf16[896,256], index: 1, kind: input, shape index: {}]   ;;  %s2607_s2 = inlined_call_operand.vmem [shape: f32[1,256], index: 2, kind: input, shape index: {}]   ;;  %s2608_s3 = inlined_call_operand.vmem [shape: bf16[256,256], index: 3, kind: input, shape index: {}]   ;;  %s2609_s4 = inlined_call_operand.vmem [shape: f32[1,256], index: 4, kind: input, shape index: {}]   ;;  %s2610_s5 = inlined_call_operand.vmem [shape: bf16[256,128], index: 5, kind: input, shape index: {}]   ;;  %s2611_s6 = inlined_call_operand.vmem [shape: f32[1,128], index: 6, kind: input, shape index: {}]   ;;  %s2612_s7 = inlined_call_operand.vmem [shape: bf16[128,128], index: 7, kind: input, shape index: {}]   ;;  %s2613_s8 = inlined_call_operand.vmem [shape: f32[1,128], index: 8, kind: input, shape index: {}]   ;;  %s2614_s9 = inlined_call_operand.hbm [shape: f32[8,128], index: 9, kind: output, shape index: {}]  }
   0x1   :  { %v1724_v0 = vld [vmem:[%s2606_s1 + $0x104] ss:$8 sps:$4 sm:$0xff]   ;;  %v1726_v1 = vld [vmem:[%s2606_s1 + $0x100] ss:$8 sps:$4 sm:$0xff]   ;;  %v1727_v2 = vld [vmem:[%s2606_s1 + $0x114] ss:$8 sps:$4 sm:$0xff]  }
   0x2   :  { %791 = vmatprep.subr.bf16.mxu0 %v1724_v0  ;;  %v1729_v3 = vld [vmem:[%s2606_s1 + $0x110] ss:$8 sps:$4 sm:$0xff]   ;;  %v1730_v4 = vld [vmem:[%s2606_s1 + $0x124] ss:$8 sps:$4 sm:$0xff]   ;;  %v1732_v5 = vld [vmem:[%s2606_s1 + $0x120] ss:$8 sps:$4 sm:$0xff]  }
   0x3   :  { %792 = vmatpush1.bf16.msra.mxu0 %v1726_v1  ;;  %v1733_v6 = vld [vmem:[%s2606_s1 + $0x134] ss:$8 sps:$4 sm:$0xff]   ;;  %v1735_v7 = vld [vmem:[%s2606_s1 + $0x130] ss:$8 sps:$4 sm:$0xff]   ;;  %v1736_v8 = vld [vmem:[%s2606_s1 + $0x144] ss:$8 sps:$4 sm:$0xff]  }
   0x4   :  { %793 = vmatprep.subr.bf16.mxu0 %v1727_v2  ;;  %v1738_v9 = vld [vmem:[%s2606_s1 + $0x140] ss:$8 sps:$4 sm:$0xff]   ;;  %v1739_v10 = vld [vmem:[%s2606_s1 + $0x154] ss:$8 sps:$4 sm:$0xff]   ;;  %v1741_v11 = vld [vmem:[%s2606_s1 + $0x150] ss:$8 sps:$4 sm:$0xff]  }
   0x5   :  { %v1742_v12 = vld [vmem:[%s2606_s1 + $0x164] ss:$8 sps:$4 sm:$0xff]   ;;  %v1744_v15 = vld [vmem:[%s2606_s1 + $0x160] ss:$8 sps:$4 sm:$0xff]   ;;  %v1745_v16 = vld [vmem:[%s2606_s1 + $0x174] ss:$8 sps:$4 sm:$0xff]  }
   0x6   :  { %v2095_v13 = vld [vmem:[%s2605_s0 + $0x8] sm:$0xff]  ;;  %v1747_v17 = vld [vmem:[%s2606_s1 + $0x170] ss:$8 sps:$4 sm:$0xff]   ;;  %v1751_v20 = vld [vmem:[%s2606_s1 + $0x194] ss:$8 sps:$4 sm:$0xff]  }
   0x7   :  { %794 = vmatpush1.bf16.msra.mxu0 %v1729_v3  ;;  %v1483_v14 = vcombine.high %v2095_v13, %v2095_v13  ;;  %v1748_v18 = vld [vmem:[%s2606_s1 + $0x184] ss:$8 sps:$4 sm:$0xff]   ;;  %v1750_v19 = vld [vmem:[%s2606_s1 + $0x180] ss:$8 sps:$4 sm:$0xff]   ;;  %v1801_v23 = vld [vmem:[%s2606_s1 + $0x14] ss:$8 sps:$4 sm:$0xff]   ;;  %v1482_v54 = vcombine.low %v2095_v13, %v2095_v13 }
   0x8   :  { %795 = vmatprep.subr.bf16.mxu0 %v1730_v4  ;;  %v1795_v21 = vld [vmem:[%s2606_s1 + $0x4] ss:$8 sps:$4 sm:$0xff]   ;;  %v1797_v22 = vld [vmem:[%s2606_s1] ss:$8 sps:$4 sm:$0xff]   ;;  %v1803_v24 = vld [vmem:[%s2606_s1 + $0x10] ss:$8 sps:$4 sm:$0xff]  }
   0x9   :  { %823 = vmatprep.mubr.bf16.mxu0 %v1483_v14  ;;  %750 = vmatprep.subr.bf16.mxu1 %v1795_v21  ;;  %v1753_v25 = vld [vmem:[%s2606_s1 + $0x190] ss:$8 sps:$4 sm:$0xff]   ;;  %v1754_v26 = vld [vmem:[%s2606_s1 + $0x1a4] ss:$8 sps:$4 sm:$0xff]   ;;  %v1756_v28 = vld [vmem:[%s2606_s1 + $0x1a0] ss:$8 sps:$4 sm:$0xff]  }
   0xa   :  { %751 = vmatpush1.bf16.msra.mxu1 %v1797_v22  ;;  %v1807_v27 = vld [vmem:[%s2606_s1 + $0x24] ss:$8 sps:$4 sm:$0xff]   ;;  %v1809_v29 = vld [vmem:[%s2606_s1 + $0x20] ss:$8 sps:$4 sm:$0xff]   ;;  %v1813_v30 = vld [vmem:[%s2606_s1 + $0x34] ss:$8 sps:$4 sm:$0xff]  }
   0xb   :  { %796 = vmatpush1.bf16.msra.mxu0 %v1732_v5  ;;  %752 = vmatprep.subr.bf16.mxu1 %v1801_v23  ;;  %v1757_v31 = vld [vmem:[%s2606_s1 + $0x1b4] ss:$8 sps:$4 sm:$0xff]   ;;  %v1759_v32 = vld [vmem:[%s2606_s1 + $0x1b0] ss:$8 sps:$4 sm:$0xff]   ;;  %v1819_v34 = vld [vmem:[%s2606_s1 + $0x44] ss:$8 sps:$4 sm:$0xff]  }
   0xc   :  { %797 = vmatprep.subr.bf16.mxu0 %v1733_v6  ;;  %v1815_v33 = vld [vmem:[%s2606_s1 + $0x30] ss:$8 sps:$4 sm:$0xff]   ;;  %v1760_v35 = vld [vmem:[%s2606_s1 + $0x1c4] ss:$8 sps:$4 sm:$0xff]   ;;  %v1762_v36 = vld [vmem:[%s2606_s1 + $0x1c0] ss:$8 sps:$4 sm:$0xff]  }
   0xd   :  { %v1821_v37 = vld [vmem:[%s2606_s1 + $0x40] ss:$8 sps:$4 sm:$0xff]   ;;  %v1825_v38 = vld [vmem:[%s2606_s1 + $0x54] ss:$8 sps:$4 sm:$0xff]   ;;  %v1765_v40 = vld [vmem:[%s2606_s1 + $0x1d0] ss:$8 sps:$4 sm:$0xff]  }
   0xe   :  { %753 = vmatpush1.bf16.msra.mxu1 %v1803_v24  ;;  %v1763_v39 = vld [vmem:[%s2606_s1 + $0x1d4] ss:$8 sps:$4 sm:$0xff]   ;;  %v1827_v41 = vld [vmem:[%s2606_s1 + $0x50] ss:$8 sps:$4 sm:$0xff]   ;;  %v1831_v42 = vld [vmem:[%s2606_s1 + $0x64] ss:$8 sps:$4 sm:$0xff]  }
   0xf   :  { %798 = vmatpush1.bf16.msra.mxu0 %v1735_v7  ;;  %754 = vmatprep.subr.bf16.mxu1 %v1807_v27  ;;  %v1766_v43 = vld [vmem:[%s2606_s1 + $0x1e4] ss:$8 sps:$4 sm:$0xff]   ;;  %v1768_v44 = vld [vmem:[%s2606_s1 + $0x1e0] ss:$8 sps:$4 sm:$0xff]   ;;  %v1837_v46 = vld [vmem:[%s2606_s1 + $0x74] ss:$8 sps:$4 sm:$0xff]  }
  0x10   :  { %799 = vmatprep.subr.bf16.mxu0 %v1736_v8  ;;  %v1833_v45 = vld [vmem:[%s2606_s1 + $0x60] ss:$8 sps:$4 sm:$0xff]   ;;  %v1769_v47 = vld [vmem:[%s2606_s1 + $0x1f4] ss:$8 sps:$4 sm:$0xff]   ;;  %v1771_v48 = vld [vmem:[%s2606_s1 + $0x1f0] ss:$8 sps:$4 sm:$0xff]  }
  0x11   :  { %v1839_v49 = vld [vmem:[%s2606_s1 + $0x70] ss:$8 sps:$4 sm:$0xff]   ;;  %v1843_v50 = vld [vmem:[%s2606_s1 + $0x84] ss:$8 sps:$4 sm:$0xff]   ;;  %v1774_v52 = vld [vmem:[%s2606_s1 + $0x200] ss:$8 sps:$4 sm:$0xff]  }
  0x12   :  { %755 = vmatpush1.bf16.msra.mxu1 %v1809_v29  ;;  %v1776_v51 = vld [vmem:[%s2606_s1 + $0x204] ss:$8 sps:$4 sm:$0xff]   ;;  %v2216_v53 = vld [vmem:[%s2605_s0 + $0x10] sm:$0xff]  ;;  %v1845_v55 = vld [vmem:[%s2606_s1 + $0x80] ss:$8 sps:$4 sm:$0xff]  }
  0x13   :  { %800 = vmatpush1.bf16.msra.mxu0 %v1738_v9  ;;  %756 = vmatprep.subr.bf16.mxu1 %v1813_v30  ;;  %v1849_v56 = vld [vmem:[%s2606_s1 + $0x94] ss:$8 sps:$4 sm:$0xff]   ;;  %v1485_v58 = vcombine.high %v2216_v53, %v2216_v53  ;;  %v1777_v59 = vld [vmem:[%s2606_s1 + $0x210] ss:$8 sps:$4 sm:$0xff]   ;;  %v1857_v61 = vld [vmem:[%s2606_s1 + $0xa4] ss:$8 sps:$4 sm:$0xff]  }
  0x14   :  { %801 = vmatprep.subr.bf16.mxu0 %v1739_v10  ;;  %v1779_v57 = vld [vmem:[%s2606_s1 + $0x214] ss:$8 sps:$4 sm:$0xff]   ;;  %v1851_v60 = vld [vmem:[%s2606_s1 + $0x90] ss:$8 sps:$4 sm:$0xff]   ;;  %v1782_v62 = vld [vmem:[%s2606_s1 + $0x224] ss:$8 sps:$4 sm:$0xff]  }
  0x15   :  { %v1780_v63 = vld [vmem:[%s2606_s1 + $0x220] ss:$8 sps:$4 sm:$0xff]   ;;  %v1863_v1 = vld [vmem:[%s2606_s1 + $0xb4] ss:$8 sps:$4 sm:$0xff]   ;;  %v1865_v3 = vld [vmem:[%s2606_s1 + $0xb0] ss:$8 sps:$4 sm:$0xff]  }
  0x16   :  { %757 = vmatpush1.bf16.msra.mxu1 %v1815_v33  ;;  %v1859_v0 = vld [vmem:[%s2606_s1 + $0xa0] ss:$8 sps:$4 sm:$0xff]   ;;  %v1785_v2 = vld [vmem:[%s2606_s1 + $0x234] ss:$8 sps:$4 sm:$0xff]   ;;  %v1783_v5 = vld [vmem:[%s2606_s1 + $0x230] ss:$8 sps:$4 sm:$0xff]  }
  0x17   :  { %802 = vmatpush1.bf16.msra.mxu0 %v1741_v11  ;;  %758 = vmatprep.subr.bf16.mxu1 %v1819_v34  ;;  %v37_v4 = vld [vmem:[%s2605_s0] sm:$0xff]  ;;  %v1875_v11 = vld [vmem:[%s2606_s1 + $0xd4] ss:$8 sps:$4 sm:$0xff]   ;;  %v1789_v13 = vld [vmem:[%s2606_s1 + $0x250] ss:$8 sps:$4 sm:$0xff]  }
  0x18   :  { %803 = vmatprep.subr.bf16.mxu0 %v1742_v12  ;;  %v1869_v6 = vld [vmem:[%s2606_s1 + $0xc4] ss:$8 sps:$4 sm:$0xff]   ;;  %v1481_v7 = vcombine.high %v37_v4, %v37_v4  ;;  %v1786_v9 = vld [vmem:[%s2606_s1 + $0x240] ss:$8 sps:$4 sm:$0xff]   ;;  %v1791_v12 = vld [vmem:[%s2606_s1 + $0x254] ss:$8 sps:$4 sm:$0xff]  }
  0x19   :  { %v1788_v8 = vld [vmem:[%s2606_s1 + $0x244] ss:$8 sps:$4 sm:$0xff]   ;;  %v1871_v10 = vld [vmem:[%s2606_s1 + $0xc0] ss:$8 sps:$4 sm:$0xff]   ;;  %v1877_v14 = vld [vmem:[%s2606_s1 + $0xd0] ss:$8 sps:$4 sm:$0xff]  }
  0x1a   :  { %759 = vmatpush1.bf16.msra.mxu1 %v1821_v37  ;;  %782 = vmatprep.mubr.bf16.mxu1 %v1481_v7  ;;  %v1798_v21 = vld [vmem:[%s2606_s1 + $0x270] ss:$8 sps:$4 sm:$0xff]   ;;  %v1901_v23 = vld [vmem:[%s2608_s3 + $0x4] ss:$8 sps:$4 sm:$0xff]   ;;  %v1899_v27 = vld [vmem:[%s2608_s3] ss:$8 sps:$4 sm:$0xff]  }
  0x1b   :  { %804 = vmatpush1.bf16.msra.mxu0 %v1744_v15  ;;  %760 = vmatprep.subr.bf16.mxu1 %v1825_v38  ;;  %v1881_v15 = vld [vmem:[%s2606_s1 + $0xe4] ss:$8 sps:$4 sm:$0xff]   ;;  %v1889_v22 = vld [vmem:[%s2606_s1 + $0xf0] ss:$8 sps:$4 sm:$0xff]   ;;  %v1812_v29 = vld [vmem:[%s2606_s1 + $0x294] ss:$8 sps:$4 sm:$0xff]  }
  0x1c   :  { %805 = vmatprep.subr.bf16.mxu0 %v1745_v16  ;;  %v1794_v16 = vld [vmem:[%s2606_s1 + $0x264] ss:$8 sps:$4 sm:$0xff]   ;;  %v1902_v30 = vld [vmem:[%s2608_s3 + $0x10] ss:$8 sps:$4 sm:$0xff]   ;;  %v1905_v34 = vld [vmem:[%s2608_s3 + $0x20] ss:$8 sps:$4 sm:$0xff]  }
  0x1d   :  { %v1806_v24 = vld [vmem:[%s2606_s1 + $0x284] ss:$8 sps:$4 sm:$0xff]   ;;  %v1824_v37 = vld [vmem:[%s2606_s1 + $0x2b4] ss:$8 sps:$4 sm:$0xff]   ;;  %v1908_v38 = vld [vmem:[%s2608_s3 + $0x30] ss:$8 sps:$4 sm:$0xff]  }
  0x1e   :  { %761 = vmatpush1.bf16.msra.mxu1 %v1827_v41  ;;  %v1818_v33 = vld [vmem:[%s2606_s1 + $0x2a4] ss:$8 sps:$4 sm:$0xff]  }
  0x1f   :  { %806 = vmatpush1.bf16.msra.mxu0 %v1747_v17  ;;  %762 = vmatprep.subr.bf16.mxu1 %v1831_v42  ;;  %v1792_v17 = vld [vmem:[%s2606_s1 + $0x260] ss:$8 sps:$4 sm:$0xff]   ;;  %v1830_v41 = vld [vmem:[%s2606_s1 + $0x2c4] ss:$8 sps:$4 sm:$0xff]  }
  0x20   :  { %807 = vmatprep.subr.bf16.mxu0 %v1748_v18  ;;  %v1883_v18 = vld [vmem:[%s2606_s1 + $0xe0] ss:$8 sps:$4 sm:$0xff]  }
  0x21   :  { %v1911_v42 = vld [vmem:[%s2608_s3 + $0x40] ss:$8 sps:$4 sm:$0xff]  }
  0x22   :  { %763 = vmatpush1.bf16.msra.mxu1 %v1833_v45  ;;  %v1836_v45 = vld [vmem:[%s2606_s1 + $0x2d4] ss:$8 sps:$4 sm:$0xff]  }
  0x23   :  { %808 = vmatpush1.bf16.msra.mxu0 %v1750_v19  ;;  %764 = vmatprep.subr.bf16.mxu1 %v1837_v46  ;;  %v1887_v19 = vld [vmem:[%s2606_s1 + $0xf4] ss:$8 sps:$4 sm:$0xff]  }
  0x24   :  { %809 = vmatprep.subr.bf16.mxu0 %v1751_v20  ;;  %v1800_v20 = vld [vmem:[%s2606_s1 + $0x274] ss:$8 sps:$4 sm:$0xff]  }
  0x26   :  { %765 = vmatpush1.bf16.msra.mxu1 %v1839_v49 }
  0x27   :  { %810 = vmatpush1.bf16.msra.mxu0 %v1753_v25  ;;  %766 = vmatprep.subr.bf16.mxu1 %v1843_v50  ;;  %v1804_v25 = vld [vmem:[%s2606_s1 + $0x280] ss:$8 sps:$4 sm:$0xff]  }
  0x28   :  { %811 = vmatprep.subr.bf16.mxu0 %v1754_v26  ;;  %v1480_v26 = vcombine.low %v37_v4, %v37_v4 }
  0x2a   :  { %767 = vmatpush1.bf16.msra.mxu1 %v1845_v55 }
  0x2b   :  { %812 = vmatpush1.bf16.msra.mxu0 %v1756_v28  ;;  %768 = vmatprep.subr.bf16.mxu1 %v1849_v56  ;;  %v1904_v28 = vld [vmem:[%s2608_s3 + $0x14] ss:$8 sps:$4 sm:$0xff]  }
  0x2c   :  { %813 = vmatprep.subr.bf16.mxu0 %v1757_v31  ;;  %v1810_v31 = vld [vmem:[%s2606_s1 + $0x290] ss:$8 sps:$4 sm:$0xff]  }
  0x2e   :  { %769 = vmatpush1.bf16.msra.mxu1 %v1851_v60 }
  0x2f   :  { %814 = vmatpush1.bf16.msra.mxu0 %v1759_v32  ;;  %770 = vmatprep.subr.bf16.mxu1 %v1857_v61  ;;  %v1907_v32 = vld [vmem:[%s2608_s3 + $0x24] ss:$8 sps:$4 sm:$0xff]  }
  0x30   :  { %815 = vmatprep.subr.bf16.mxu0 %v1760_v35  ;;  %v1816_v35 = vld [vmem:[%s2606_s1 + $0x2a0] ss:$8 sps:$4 sm:$0xff]  }
  0x32   :  { %771 = vmatpush1.bf16.msra.mxu1 %v1859_v0 }
  0x33   :  { %816 = vmatpush1.bf16.msra.mxu0 %v1762_v36  ;;  %772 = vmatprep.subr.bf16.mxu1 %v1863_v1  ;;  %v1910_v36 = vld [vmem:[%s2608_s3 + $0x34] ss:$8 sps:$4 sm:$0xff]  }
  0x34   :  { %817 = vmatprep.subr.bf16.mxu0 %v1763_v39  ;;  %v1822_v39 = vld [vmem:[%s2606_s1 + $0x2b0] ss:$8 sps:$4 sm:$0xff]  }
  0x36   :  { %773 = vmatpush1.bf16.msra.mxu1 %v1865_v3 }
  0x37   :  { %818 = vmatpush1.bf16.msra.mxu0 %v1765_v40  ;;  %774 = vmatprep.subr.bf16.mxu1 %v1869_v6  ;;  %v1913_v40 = vld [vmem:[%s2608_s3 + $0x44] ss:$8 sps:$4 sm:$0xff]  }
  0x38   :  { %819 = vmatprep.subr.bf16.mxu0 %v1766_v43  ;;  %v1828_v43 = vld [vmem:[%s2606_s1 + $0x2c0] ss:$8 sps:$4 sm:$0xff]  }
  0x3a   :  { %775 = vmatpush1.bf16.msra.mxu1 %v1871_v10 }
  0x3b   :  { %820 = vmatpush1.bf16.msra.mxu0 %v1768_v44  ;;  %776 = vmatprep.subr.bf16.mxu1 %v1875_v11  ;;  %v1916_v44 = vld [vmem:[%s2608_s3 + $0x54] ss:$8 sps:$4 sm:$0xff]  }
  0x3c   :  { %821 = vmatprep.subr.bf16.mxu0 %v1769_v47 }
  0x3e   :  { %777 = vmatpush1.bf16.msra.mxu1 %v1877_v14 }
  0x3f   :  { %822 = vmatpush1.bf16.msra.mxu0 %v1771_v48  ;;  %778 = vmatprep.subr.bf16.mxu1 %v1881_v15 }
  0x40   :  { %832 = vmatprep.subr.bf16.mxu0 %v1776_v51 }
  0x42   :  { %824 = vmatmul.mubr.bf16.vlgmr.msra.gmra.mrb[0].mxu0 %v1482_v54  ;;  %779 = vmatpush1.bf16.msra.mxu1 %v1883_v18 }
  0x43   :  { %833 = vmatpush1.bf16.msra.mxu0 %v1774_v52  ;;  %864 = vmatprep.mubr.bf16.mxu0 %v1485_v58 }
  0x44   :  { %834 = vmatprep.subr.bf16.mxu0 %v1779_v57  ;;  %780 = vmatprep.subr.bf16.mxu1 %v1887_v19 }
  0x46   :  { %781 = vmatpush1.bf16.msra.mxu1 %v1889_v22 }
  0x47   :  { %835 = vmatpush1.bf16.msra.mxu0 %v1777_v59  ;;  %1122 = vmatprep.subr.bf16.mxu1 %v1901_v23 }
  0x48   :  { %836 = vmatprep.subr.bf16.mxu0 %v1782_v62 }
  0x49   :  { %783 = vmatmul.mubr.bf16.vlgmr.msra.gmra.mrb[0].mxu1 %v1480_v26 }
  0x4a   :  { %1123 = vmatpush1.bf16.msra.mxu1 %v1899_v27 }
  0x4b   :  { %837 = vmatpush1.bf16.msra.mxu0 %v1780_v63  ;;  %1124 = vmatprep.subr.bf16.mxu1 %v1904_v28 }
  0x4c   :  { %838 = vmatprep.subr.bf16.mxu0 %v1785_v2 }
  0x4e   :  { %1125 = vmatpush1.bf16.msra.mxu1 %v1902_v30 }
  0x4f   :  { %839 = vmatpush1.bf16.msra.mxu0 %v1783_v5  ;;  %1126 = vmatprep.subr.bf16.mxu1 %v1907_v32 }
  0x50   :  { %840 = vmatprep.subr.bf16.mxu0 %v1788_v8 }
  0x52   :  { %1127 = vmatpush1.bf16.msra.mxu1 %v1905_v34 }
  0x53   :  { %841 = vmatpush1.bf16.msra.mxu0 %v1786_v9  ;;  %1128 = vmatprep.subr.bf16.mxu1 %v1910_v36 }
  0x54   :  { %842 = vmatprep.subr.bf16.mxu0 %v1791_v12 }
  0x56   :  { %1129 = vmatpush1.bf16.msra.mxu1 %v1908_v38 }
  0x57   :  { %843 = vmatpush1.bf16.msra.mxu0 %v1789_v13  ;;  %1130 = vmatprep.subr.bf16.mxu1 %v1913_v40 }
  0x58   :  { %844 = vmatprep.subr.bf16.mxu0 %v1794_v16 }
  0x5b   :  { %845 = vmatpush1.bf16.msra.mxu0 %v1792_v17 }
  0x5c   :  { %846 = vmatprep.subr.bf16.mxu0 %v1800_v20 }
  0x5f   :  { %847 = vmatpush1.bf16.msra.mxu0 %v1798_v21 }
  0x60   :  { %848 = vmatprep.subr.bf16.mxu0 %v1806_v24 }
  0x63   :  { %849 = vmatpush1.bf16.msra.mxu0 %v1804_v25 }
  0x64   :  { %850 = vmatprep.subr.bf16.mxu0 %v1812_v29 }
  0x67   :  { %851 = vmatpush1.bf16.msra.mxu0 %v1810_v31 }
  0x68   :  { %852 = vmatprep.subr.bf16.mxu0 %v1818_v33 }
  0x6b   :  { %853 = vmatpush1.bf16.msra.mxu0 %v1816_v35 }
  0x6c   :  { %854 = vmatprep.subr.bf16.mxu0 %v1824_v37 }
  0x6f   :  { %855 = vmatpush1.bf16.msra.mxu0 %v1822_v39 }
  0x70   :  { %856 = vmatprep.subr.bf16.mxu0 %v1830_v41 }
  0x71   :  { %14 = vsyncpa [#allocation3], 0  ;;  %1131 = vmatpush1.bf16.msra.mxu1 %v1911_v42  ;;  %v1914_v46 = vld [vmem:[%s2608_s3 + $0x50] ss:$8 sps:$4 sm:$0xff]   ;;  %v1919_v48 = vld [vmem:[%s2608_s3 + $0x64] ss:$8 sps:$4 sm:$0xff]   ;;  %v1484_v59 = vcombine.low %v2216_v53, %v2216_v53  ;;  %v155_v32 = vlaneseq }
  0x72   :  { %v1834_v47 = vld [vmem:[%s2606_s1 + $0x2d0] ss:$8 sps:$4 sm:$0xff]   ;;  %1132 = vmatprep.subr.bf16.mxu1 %v1916_v44  ;;  %v1842_v49 = vld [vmem:[%s2606_s1 + $0x2e4] ss:$8 sps:$4 sm:$0xff]   ;;  %v1917_v50 = vld [vmem:[%s2608_s3 + $0x60] ss:$8 sps:$4 sm:$0xff]  }
  0x73   :  { %857 = vmatpush1.bf16.msra.mxu0 %v1828_v43  ;;  %v1840_v51 = vld [vmem:[%s2606_s1 + $0x2e0] ss:$8 sps:$4 sm:$0xff]   ;;  %v1922_v52 = vld [vmem:[%s2608_s3 + $0x74] ss:$8 sps:$4 sm:$0xff]   ;;  %v1920_v55 = vld [vmem:[%s2608_s3 + $0x70] ss:$8 sps:$4 sm:$0xff]  }
  0x74   :  { %858 = vmatprep.subr.bf16.mxu0 %v1836_v45  ;;  %v1848_v54 = vld [vmem:[%s2606_s1 + $0x2f4] ss:$8 sps:$4 sm:$0xff]   ;;  %v1846_v56 = vld [vmem:[%s2606_s1 + $0x2f0] ss:$8 sps:$4 sm:$0xff]   ;;  %v1925_v57 = vld [vmem:[%s2608_s3 + $0x84] ss:$8 sps:$4 sm:$0xff]  }
  0x75   :  { %1133 = vmatpush1.bf16.msra.mxu1 %v1914_v46  ;;  %v1856_v58 = vld [vmem:[%s2606_s1 + $0x304] ss:$8 sps:$4 sm:$0xff]   ;;  %v1923_v60 = vld [vmem:[%s2608_s3 + $0x80] ss:$8 sps:$4 sm:$0xff]   ;;  %v1862_v62 = vld [vmem:[%s2606_s1 + $0x314] ss:$8 sps:$4 sm:$0xff]  }
  0x76   :  { %1134 = vmatprep.subr.bf16.mxu1 %v1919_v48  ;;  %v1854_v61 = vld [vmem:[%s2606_s1 + $0x300] ss:$8 sps:$4 sm:$0xff]   ;;  %v1928_v53 = vld [vmem:[%s2608_s3 + $0x94] ss:$8 sps:$4 sm:$0xff]   ;;  %v1926_v63 = vld [vmem:[%s2608_s3 + $0x90] ss:$8 sps:$4 sm:$0xff]  }
  0x77   :  { %859 = vmatpush1.bf16.msra.mxu0 %v1834_v47  ;;  %v1860_v0 = vld [vmem:[%s2606_s1 + $0x310] ss:$8 sps:$4 sm:$0xff]   ;;  %v1999_v1 = vmov 0   ;;  %v1931_v2 = vld [vmem:[%s2608_s3 + $0xa4] ss:$8 sps:$4 sm:$0xff]   ;;  %v156_v33 = vshrl.u32 %v155_v32, 7 }
  0x78   :  { %860 = vmatprep.subr.bf16.mxu0 %v1842_v49  ;;  %v1868_v3 = vld [vmem:[%s2606_s1 + $0x324] ss:$8 sps:$4 sm:$0xff]   ;;  %v1929_v4 = vld [vmem:[%s2608_s3 + $0xa0] ss:$8 sps:$4 sm:$0xff]   ;;  %v1934_v6 = vld [vmem:[%s2608_s3 + $0xb4] ss:$8 sps:$4 sm:$0xff]  }
  0x79   :  { %1135 = vmatpush1.bf16.msra.mxu1 %v1917_v50  ;;  %v1866_v5 = vld [vmem:[%s2606_s1 + $0x320] ss:$8 sps:$4 sm:$0xff]   ;;  %v1874_v7 = vld [vmem:[%s2606_s1 + $0x334] ss:$8 sps:$4 sm:$0xff]   ;;  %v1932_v8 = vld [vmem:[%s2608_s3 + $0xb0] ss:$8 sps:$4 sm:$0xff]  }
  0x7a   :  { %1136 = vmatprep.subr.bf16.mxu1 %v1922_v52  ;;  %v1872_v9 = vld [vmem:[%s2606_s1 + $0x330] ss:$8 sps:$4 sm:$0xff]   ;;  %v1937_v10 = vld [vmem:[%s2608_s3 + $0xc4] ss:$8 sps:$4 sm:$0xff]   ;;  %v1935_v12 = vld [vmem:[%s2608_s3 + $0xc0] ss:$8 sps:$4 sm:$0xff]  }
  0x7b   :  { %861 = vmatpush1.bf16.msra.mxu0 %v1840_v51  ;;  %v1880_v11 = vld [vmem:[%s2606_s1 + $0x344] ss:$8 sps:$4 sm:$0xff]   ;;  %v1878_v13 = vld [vmem:[%s2606_s1 + $0x340] ss:$8 sps:$4 sm:$0xff]   ;;  %v1886_v14 = vld [vmem:[%s2606_s1 + $0x354] ss:$8 sps:$4 sm:$0xff]  }
  0x7c   :  { %862 = vmatprep.subr.bf16.mxu0 %v1848_v54  ;;  %v1884_v15 = vld [vmem:[%s2606_s1 + $0x350] ss:$8 sps:$4 sm:$0xff]   ;;  %v1892_v16 = vld [vmem:[%s2606_s1 + $0x364] ss:$8 sps:$4 sm:$0xff]   ;;  %v1890_v17 = vld [vmem:[%s2606_s1 + $0x360] ss:$8 sps:$4 sm:$0xff]  }
  0x7d   :  { %1137 = vmatpush1.bf16.msra.mxu1 %v1920_v55  ;;  %v1897_v18 = vld [vmem:[%s2606_s1 + $0x374] ss:$8 sps:$4 sm:$0xff]   ;;  %v1895_v19 = vld [vmem:[%s2606_s1 + $0x370] ss:$8 sps:$4 sm:$0xff]   ;;  %v1943_v23 = vld [vmem:[%s2608_s3 + $0xe4] ss:$8 sps:$4 sm:$0xff]  }
  0x7e   :  { %1138 = vmatprep.subr.bf16.mxu1 %v1925_v57  ;;  %v1898_v20 = vld [vmem:[%s2605_s0 + $0x18] ss:$0 sps:$4 sm:$0xff]   ;;  %v1940_v22 = vld [vmem:[%s2608_s3 + $0xd4] ss:$8 sps:$4 sm:$0xff]   ;;  %v1941_v24 = vld [vmem:[%s2608_s3 + $0xe0] ss:$8 sps:$4 sm:$0xff]  }
  0x7f   :  { %863 = vmatpush1.bf16.msra.mxu0 %v1846_v56  ;;  %v1938_v21 = vld [vmem:[%s2608_s3 + $0xd0] ss:$8 sps:$4 sm:$0xff]   ;;  %v1946_v25 = vld [vmem:[%s2608_s3 + $0xf4] ss:$8 sps:$4 sm:$0xff]   ;;  %v1947_v27 = vld [vmem:[%s2610_s5 + $0x40] sm:$0xff]   ;;  %v157_v34 = vsub.s32 0, %v156_v33 }
  0x80   :  { %873 = vmatprep.subr.bf16.mxu0 %v1856_v58  ;;  %v1944_v26 = vld [vmem:[%s2608_s3 + $0xf0] ss:$8 sps:$4 sm:$0xff]   ;;  %v153_v35 = vld [vmem:[%s2607_s2] sm:$0x3]  ;;  %v161_v36 = vsub.s32 1, %v156_v33  ;;  %v1949_v52 = vld [vmem:[%s2610_s5 + $0x48] sm:$0xff]  }
  0x81   :  { %1139 = vmatpush1.bf16.msra.mxu1 %v1923_v60  ;;  %v158_v37 = vrot.slane %v153_v35, %v157_v34  ;;  %v1948_v50 = vld [vmem:[%s2610_s5] sm:$0xff]   ;;  %v1950_v54 = vld [vmem:[%s2610_s5 + $0x8] sm:$0xff]   ;;  %v1951_v55 = vld [vmem:[%s2610_s5 + $0x50] sm:$0xff]   ;;  %vm2001_vm0 = vmmov 0  }
  0x82   :  { %865 = vmatmul.mubr.bf16.vlgmr.msra.gmra.mrb[0].mxu0 %v1484_v59  ;;  %1140 = vmatprep.subr.bf16.mxu1 %v1928_v53  ;;  %v162_v38 = vrot.slane %v153_v35, %v161_v36  ;;  %v1952_v56 = vld [vmem:[%s2610_s5 + $0x10] sm:$0xff]   ;;  %v1953_v57 = vld [vmem:[%s2610_s5 + $0x58] sm:$0xff]   ;;  %v1955_v59 = vld [vmem:[%s2610_s5 + $0x60] sm:$0xff]  }
  0x83   :  { %874 = vmatpush1.bf16.msra.mxu0 %v1854_v61  ;;  %905 = vmatprep.mubr.bf16.mxu0 %v1999_v1  ;;  %v1954_v58 = vld [vmem:[%s2610_s5 + $0x18] sm:$0xff]   ;;  %v1956_v60 = vld [vmem:[%s2610_s5 + $0x20] sm:$0xff]   ;;  %v1957_v61 = vld [vmem:[%s2610_s5 + $0x68] sm:$0xff]  }
  0x84   :  { %875 = vmatprep.subr.bf16.mxu0 %v1862_v62  ;;  %v1958_v62 = vld [vmem:[%s2610_s5 + $0x28] sm:$0xff]   ;;  %v1959_v53 = vld [vmem:[%s2610_s5 + $0x70] sm:$0xff]   ;;  %v1962_v1 = vld [vmem:[%s2610_s5 + $0x38] sm:$0xff]  }
  0x85   :  { %1141 = vmatpush1.bf16.msra.mxu1 %v1926_v63  ;;  %v1960_v63 = vld [vmem:[%s2610_s5 + $0x30] sm:$0xff]   ;;  %v1648_v33 = vld [vmem:[%s2613_s8] ss:$0 sm:$0xff] }
  0x86   :  { %1142 = vmatprep.subr.bf16.mxu1 %v1931_v2  ;;  %v2000_v2 = vmov 0.0  }
  0x87   :  { %876 = vmatpush1.bf16.msra.mxu0 %v1860_v0  ;;  %v1961_v0 = vld [vmem:[%s2610_s5 + $0x78] sm:$0xff]  }
  0x88   :  { %877 = vmatprep.subr.bf16.mxu0 %v1868_v3  ;;  %v950_v3 = vld [vmem:[%s2609_s4] sm:$0x3] }
  0x89   :  { %1143 = vmatpush1.bf16.msra.mxu1 %v1929_v4  ;;  %v955_v4 = vrot.slane %v950_v3, %v157_v34 }
  0x8a   :  { %1144 = vmatprep.subr.bf16.mxu1 %v1934_v6 }
  0x8b   :  { %878 = vmatpush1.bf16.msra.mxu0 %v1866_v5  ;;  %v959_v5 = vrot.slane %v950_v3, %v161_v36 }
  0x8c   :  { %879 = vmatprep.subr.bf16.mxu0 %v1874_v7 }
  0x8d   :  { %1145 = vmatpush1.bf16.msra.mxu1 %v1932_v8 }
  0x8e   :  { %1146 = vmatprep.subr.bf16.mxu1 %v1937_v10 }
  0x8f   :  { %880 = vmatpush1.bf16.msra.mxu0 %v1872_v9 }
  0x90   :  { %881 = vmatprep.subr.bf16.mxu0 %v1880_v11 }
  0x91   :  { %1147 = vmatpush1.bf16.msra.mxu1 %v1935_v12 }
  0x92   :  { %1148 = vmatprep.subr.bf16.mxu1 %v1940_v22  ;;  %v1969_v22 = vld [vmem:[%s2612_s7 + $0x30] sm:$0xff]  }
  0x93   :  { %882 = vmatpush1.bf16.msra.mxu0 %v1878_v13 }
  0x94   :  { %883 = vmatprep.subr.bf16.mxu0 %v1886_v14 }
  0x95   :  { %1149 = vmatpush1.bf16.msra.mxu1 %v1938_v21  ;;  %v1968_v21 = vld [vmem:[%s2612_s7 + $0x28] sm:$0xff]  }
  0x96   :  { %1150 = vmatprep.subr.bf16.mxu1 %v1943_v23  ;;  %v1970_v23 = vld [vmem:[%s2612_s7 + $0x38] sm:$0xff]  }
  0x97   :  { %884 = vmatpush1.bf16.msra.mxu0 %v1884_v15  ;;  %v1963_v15 = vld [vmem:[%s2612_s7] sm:$0xff]  }
  0x98   :  { %885 = vmatprep.subr.bf16.mxu0 %v1892_v16 }
  0x99   :  { %1151 = vmatpush1.bf16.msra.mxu1 %v1941_v24 }
  0x9a   :  { %1152 = vmatprep.subr.bf16.mxu1 %v1946_v25  ;;  %v1631_v25 = vld [vmem:[%s2611_s6] ss:$0 sm:$0xff]  ;;  %s2002_s6 = smov [#allocation2]  }
  0x9b   :  { %886 = vmatpush1.bf16.msra.mxu0 %v1890_v17  ;;  %v1964_v17 = vld [vmem:[%s2612_s7 + $0x8] sm:$0xff]  }
  0x9c   :  { %887 = vmatprep.subr.bf16.mxu0 %v1897_v18  ;;  %v1965_v18 = vld [vmem:[%s2612_s7 + $0x10] sm:$0xff]  }
  0x9d   :  { %1153 = vmatpush1.bf16.msra.mxu1 %v1944_v26 }
  0x9e   :  { %1657 = vmatprep.subr.bf16.mxu1 %v1947_v27 }
  0x9f   :  { %888 = vmatpush1.bf16.msra.mxu0 %v1895_v19  ;;  %v1966_v19 = vld [vmem:[%s2612_s7 + $0x18] sm:$0xff]  }
  0xa2   :  { %906 = vmatmul.mubr.bf16.vlgmr.msra.gmra.mrb[0].mxu0 %v1898_v20  ;;  %v1967_v20 = vld [vmem:[%s2612_s7 + $0x20] sm:$0xff]   ;;  %s1472_s7 = sshll.u32 %s2002_s6, 4  ;;  %s1473_s7 = int_to_ptr.vmem [resolvable:$true] %s1472_s7 }
  0xa3   :  { %s1975_s8 = scalar_lea.vmem %s1473_s7, 128  ;;  %p1980_p1 = scmp.lt.s32.totalorder %s1473_s7, %s1473_s7 }
  0xa4   :  { %p1976_p0 = scmp.ne.s32.totalorder %s1473_s7, %s1975_s8  ;;  %p1981_p2 = scmp.lt.s32.totalorder %s1975_s8, %s1975_s8 }
  0xa6   :  { %p1982_p3 = por %p1981_p2, %p1980_p1 }
  0xa8   :  { %p1983_p4 = pnand %p1982_p3, %p1976_p0 }
 0x11c   :  { %v784_v28 = vpop.f32.mrb[0].mxu1 }
 0x11d   :  { %v786_v29 = vpop.f32.mrb[1].mxu1  ;;  %v785_v39 = vadd.f32 %v784_v28, %v158_v37 }
 0x11e   :  { %v788_v30 = vpop.f32.mrb[2].mxu1  ;;  %v787_v40 = vadd.f32 %v786_v29, %v162_v38 }
 0x11f   :  { %v789_v31 = vpop.f32.mrb[3].mxu1 }
 0x175   :  { %v907_v41 = vpop.f32.mrb[0].mxu0 }
 0x176   :  { %v1709_v42 = vadd.f32 %v907_v41, %v785_v39  ;;  %v909_v43 = vpop.f32.mrb[1].mxu0 }
 0x177   :  { %v1711_v44 = vadd.f32 %v909_v43, %v787_v40  ;;  %v911_v45 = vpop.f32.mrb[2].mxu0 }
 0x178   :  { %v914_v46 = vmax.f32 %v1709_v42, 0.0  ;;  %v912_v47 = vpop.f32.mrb[3].mxu0 }
 0x179   :  { %v915_v48 = vmax.f32 %v1711_v44, 0.0 }
 0x17a   :  { %v916_v51 = vpack.c.bf16 %v914_v46, %v914_v46 }
 0x17b   :  { %v917_v49 = vpack.c.bf16 %v915_v48, %v915_v48 }
 0x17d   :  { %1154 = vmatprep.mubr.bf16.mxu1 %v917_v49 }
 0x17e   :  { %1155 = vmatmul.mubr.bf16.vlgmr.msra.gmra.mrb[4].mxu1 %v916_v51 }
 0x17f   :  { %1658 = vmatpush3.bf16.msra.mxu1 %v1948_v50 }
 0x180   :  { %1659 = vmatprep.subr.bf16.mxu1 %v1949_v52 }
 0x183   :  { %1660 = vmatpush3.bf16.msra.mxu1 %v1950_v54 }
 0x184   :  { %1661 = vmatprep.subr.bf16.mxu1 %v1951_v55 }
 0x187   :  { %1662 = vmatpush3.bf16.msra.mxu1 %v1952_v56 }
 0x188   :  { %1663 = vmatprep.subr.bf16.mxu1 %v1953_v57 }
 0x18b   :  { %1664 = vmatpush3.bf16.msra.mxu1 %v1954_v58 }
 0x18c   :  { %1665 = vmatprep.subr.bf16.mxu1 %v1955_v59 }
 0x18f   :  { %1666 = vmatpush3.bf16.msra.mxu1 %v1956_v60 }
 0x190   :  { %1667 = vmatprep.subr.bf16.mxu1 %v1957_v61 }
 0x193   :  { %1668 = vmatpush3.bf16.msra.mxu1 %v1958_v62 }
 0x194   :  { %1669 = vmatprep.subr.bf16.mxu1 %v1959_v53 }
 0x197   :  { %1670 = vmatpush3.bf16.msra.mxu1 %v1960_v63 }
 0x198   :  { %1671 = vmatprep.subr.bf16.mxu1 %v1961_v0 }
 0x19b   :  { %1672 = vmatpush3.bf16.msra.mxu1 %v1962_v1 }
 0x19c   :  { %1688 = vmatprep.subr.bf16.mxu1 %v2000_v2 }
 0x251   :  { %v1156_v6 = vpop.f32.mrb[4].mxu1 }
 0x252   :  { %v1157_v7 = vadd.f32 %v1156_v6, %v955_v4  ;;  %v1158_v8 = vpop.f32.mrb[5].mxu1 }
 0x253   :  { %v1159_v9 = vadd.f32 %v1158_v8, %v959_v5  ;;  %v1160_v10 = vpop.f32.mrb[6].mxu1 }
 0x254   :  { %v1163_v11 = vmax.f32 %v1157_v7, 0.0  ;;  %v1161_v12 = vpop.f32.mrb[7].mxu1 }
 0x255   :  { %v1164_v13 = vmax.f32 %v1159_v9, 0.0 }
 0x256   :  { %v1165_v16 = vpack.c.bf16 %v1163_v11, %v1163_v11 }
 0x257   :  { %v1166_v14 = vpack.c.bf16 %v1164_v13, %v1164_v13 }
 0x259   :  { %1334 = vmatprep.mubr.bf16.mxu1 %v1166_v14 }
 0x25a   :  { %1335 = vmatmul.mubr.bf16.vlgmr.msra.gmra.mrb[8].mxu1 %v1165_v16 }
 0x25b   :  { %1689 = vmatpush3.bf16.msra.mxu1 %v1963_v15  ;;  %1704 = vmatprep.mubr.msk.bf16.mxu1 %vm2001_vm0, %v2000_v2 }
 0x25c   :  { %1690 = vmatprep.subr.bf16.mxu1 %v2000_v2 }
 0x25f   :  { %1691 = vmatpush3.bf16.msra.mxu1 %v1964_v17 }
 0x260   :  { %1692 = vmatprep.subr.bf16.mxu1 %v2000_v2 }
 0x263   :  { %1693 = vmatpush3.bf16.msra.mxu1 %v1965_v18 }
 0x264   :  { %1694 = vmatprep.subr.bf16.mxu1 %v2000_v2 }
 0x267   :  { %1695 = vmatpush3.bf16.msra.mxu1 %v1966_v19 }
 0x268   :  { %1696 = vmatprep.subr.bf16.mxu1 %v2000_v2 }
 0x26b   :  { %1697 = vmatpush3.bf16.msra.mxu1 %v1967_v20 }
 0x26c   :  { %1698 = vmatprep.subr.bf16.mxu1 %v2000_v2 }
 0x26f   :  { %1699 = vmatpush3.bf16.msra.mxu1 %v1968_v21 }
 0x270   :  { %1700 = vmatprep.subr.bf16.mxu1 %v2000_v2 }
 0x273   :  { %1701 = vmatpush3.bf16.msra.mxu1 %v1969_v22 }
 0x274   :  { %1702 = vmatprep.subr.bf16.mxu1 %v2000_v2 }
 0x277   :  { %1703 = vmatpush3.bf16.msra.mxu1 %v1970_v23 }
 0x32d   :  { %v1673_v24 = vpop.f32.mrb[8].mxu1 }
 0x32e   :  { %v1674_v26 = vpop.f32.mrb[9].mxu1 }
 0x32f   :  { %v1675_v27 = vadd.f32 %v1674_v26, %v1673_v24  ;;  %v1676_v28 = vpop.f32.mrb[10].mxu1 }
 0x330   :  { %v1677_v29 = vpop.f32.mrb[11].mxu1 }
 0x331   :  { %v1337_v30 = vadd.f32 %v1675_v27, %v1631_v25 }
 0x333   :  { %v1342_v31 = vmax.f32 %v1337_v30, 0.0 }
 0x335   :  { %v1343_v32 = vpack.c.bf16 %v1342_v31, %v1342_v31 }
 0x337   :  { %1705 = vmatmul.mubr.bf16.vlgmr.msra.gmra.mrb[12].mxu1 %v1343_v32 }
 0x40a   :  { %v1449_v34 = vpop.f32.mrb[12].mxu1 }
 0x40b   :  { %v1450_v35 = vadd.f32 %v1648_v33, %v1449_v34  ;;  %v1706_v36 = vpop.f32.mrb[13].mxu1 }
 0x40c   :  { %v1452_v37 = vpop.f32.mrb[14].mxu1 }
 0x40d   :  { %1455 = vmax.xlane.f32.xlu0 %v1450_v35  ;;  %v1707_v38 = vpop.f32.mrb[15].mxu1 }
 0x49a   :  { %v1456_v39 = vpop.xlane.xlu0 %1455 }
 0x49b   :  { %v1457_v40 = vsub.f32 %v1450_v35, %v1456_v39 }
 0x49d   :  { %v1458_v41 = vmul.f32 1.442695, %v1457_v40 }
 0x49f   :  { %1971 = vpow2.f32 %v1458_v41 }
 0x4a9   :  { %v1972_v42 = vpop.eup %1971 }
 0x4aa   :  { %1460 = vadd.xlane.f32.xlu0 %v1972_v42 }
 0x537   :  { %v1461_v43 = vpop.xlane.xlu0 %1460 }
 0x538   :  { %1973 = vlog2.f32 %v1461_v43 }
 0x542   :  { %v1974_v44 = vpop.eup %1973 }
 0x543   :  { %v1463_v45 = vmul.f32 0.6931472, %v1974_v44 }
 0x545   :  { %v1464_v46 = vsub.f32 %v1457_v40, %v1463_v45 }
 0x547   :  { %1465 = vst [vmem:[#allocation2] sm:$0xff] %v1464_v46 }
 0x548   :  { %1986 = shalt.err (!%p1983_p4)
}
 0x549   :  { %s1987_s2 = scalar_lea.hbm %s2614_s9, 128 }
 0x54a   :  { %p1988_p5 = scmp.ne.s32.totalorder %s2614_s9, %s1987_s2  ;;  %p1991_p6 = scmp.lt.u32.totalorder %s1987_s2, %s2614_s9 }
 0x54c   :  { %p1993_p7 = pnand %p1991_p6, %p1988_p5 }
 0x54e   :  { %1996 = shalt.err (!%p1993_p7)
}
 0x54f   :  { %1475 = dma.vmem_to_hbm [thread:$0]  %s1473_s7, 128, %s2614_s9, [#allocation3]  }
 0x550   :  { %1997 = dma.done.wait [#allocation3], 128  }
 0x551   :  { %1998 = vsyncadd [#allocation3], 4294967168 }
 0x552   :  { %1479 = vsyncpa [#allocation3], 1 }

</bundles_post_ra>
